<compile_context>
chip_gen: v5e
topology: v5e:2x2
jax: 0.10.0
libtpu: 0.0.40
codegen_flags: <defaults>
</compile_context>

<pallas_src>
import jax
import jax.numpy as jnp
from jax.experimental import pallas as pl
from jax.experimental.pallas import tpu as pltpu


# ----------------------- forward (production path, no kernel) ----------------
def prompt_learner_forward(ctx):
    """ctx: (n_ctx, ctx_dim) -> (1, n_ctx, ctx_dim). Pure metadata broadcast."""
    n_ctx, ctx_dim = ctx.shape
    return jnp.broadcast_to(ctx[None, :, :], (1, n_ctx, ctx_dim))


# --------------------- fused prompt assembly (Pallas kernel) -----------------
def _assemble_prompt_kernel(prefix_ref, ctx_ref, suffix_ref, out_ref):
    # All refs are full 2-D (rows, 512) arrays resident in VMEM.
    # Three whole-row, lane-dense stores into disjoint row ranges of the output.
    n_pre = prefix_ref.shape[0]
    n_ctx = ctx_ref.shape[0]
    out_ref[0:n_pre, :] = prefix_ref[...]
    out_ref[n_pre:n_pre + n_ctx, :] = ctx_ref[...]
    out_ref[n_pre + n_ctx:, :] = suffix_ref[...]


@jax.jit
def assemble_prompts_pallas(prefix, ctx, suffix):
    """prefix (p, D), ctx (n_ctx, D), suffix (s, D) -> (1, p+n_ctx+s, D).

    Single-invocation fused concat; the leading unsqueeze is applied to the
    output outside the kernel (free metadata reshape).
    """
    n_pre, ctx_dim = prefix.shape
    n_ctx, _ = ctx.shape
    n_suf, _ = suffix.shape
    n_tok = n_pre + n_ctx + n_suf
    itemsize = jnp.dtype(ctx.dtype).itemsize

    prompts = pl.pallas_call(
        _assemble_prompt_kernel,
        out_shape=jax.ShapeDtypeStruct((n_tok, ctx_dim), ctx.dtype),
        # No grid: single invocation over full-array VMEM blocks (arrays are tiny).
        in_specs=[
            pl.BlockSpec(memory_space=pltpu.MemorySpace.VMEM),
            pl.BlockSpec(memory_space=pltpu.MemorySpace.VMEM),
            pl.BlockSpec(memory_space=pltpu.MemorySpace.VMEM),
        ],
        out_specs=pl.BlockSpec(memory_space=pltpu.MemorySpace.VMEM),
        cost_estimate=pl.CostEstimate(
            flops=0,
            transcendentals=0,
            bytes_accessed=2 * n_tok * ctx_dim * itemsize,
        ),
    )(prefix, ctx, suffix)
    return prompts[None, :, :]


class PromptLearner:
    """JAX/Pallas port of cliport.models.coop.PromptLearner (generic-context init)."""

    def __init__(self, n_ctx=8, ctx_dim=512, n_tokens=77, dtype=jnp.float32,
                 key=None):
        if key is None:
            key = jax.random.PRNGKey(0)
        k_ctx, k_pre, k_suf = jax.random.split(key, 3)
        # nn.init.normal_(ctx_vectors, std=0.02) -- generic-context branch.
        self.ctx = (0.02 * jax.random.normal(k_ctx, (n_ctx, ctx_dim))).astype(dtype)
        # TODO(synk): token_prefix / token_suffix come from CLIP tokenize() +
        # clip_model.token_embedding (no Pallas equivalent); deterministic
        # stand-in buffers here. They are read but unused by forward, matching
        # the PyTorch module.
        n_suf = n_tokens - 1 - n_ctx
        self.token_prefix = (0.02 * jax.random.normal(k_pre, (1, 1, ctx_dim))).astype(dtype)
        self.token_suffix = (0.02 * jax.random.normal(k_suf, (1, n_suf, ctx_dim))).astype(dtype)

    def __call__(self):
        # Matches PyTorch forward exactly: return the expanded context only.
        ctx = self.ctx
        prefix = self.token_prefix  # noqa: F841  (read but unused, as in PyTorch)
        suffix = self.token_suffix  # noqa: F841
        return prompt_learner_forward(ctx)

    def assemble_prompts(self):
        """Fused prefix ‖ ctx ‖ suffix assembly (what the text encoder consumes)."""
        return assemble_prompts_pallas(
            self.token_prefix[0], self.ctx, self.token_suffix[0])


if __name__ == "__main__":
    key = jax.random.PRNGKey(0)
    n_ctx, ctx_dim, n_tokens = 8, 512, 77  # ctx_dim fixed at 512 by the module

    learner = PromptLearner(n_ctx=n_ctx, ctx_dim=ctx_dim, n_tokens=n_tokens,
                            dtype=jnp.float32, key=key)

    # Forward (production, zero-cost broadcast) — the module's actual semantics.
    context = jax.block_until_ready(learner())
    ref = jax.block_until_ready(prompt_learner_forward(learner.ctx))
    assert context.shape == (1, n_ctx, ctx_dim), context.shape
    assert context.dtype == learner.ctx.dtype, context.dtype
    assert jnp.array_equal(context, ref)

    # Pallas kernel: fused prompt assembly (earns its launch by replacing the
    # downstream concatenate).
    prompts = jax.block_until_ready(learner.assemble_prompts())
    assert prompts.shape == (1, n_tokens, ctx_dim), prompts.shape
    assert prompts.dtype == learner.ctx.dtype, prompts.dtype
    assert jnp.array_equal(prompts[0, 0:1, :], learner.token_prefix[0])
    assert jnp.array_equal(prompts[0, 1:1 + n_ctx, :], learner.ctx)
    assert jnp.array_equal(prompts[0, 1 + n_ctx:, :], learner.token_suffix[0])
    # The forward's expanded ctx is exactly the middle slab of the assembled prompt.
    assert jnp.array_equal(prompts[:, 1:1 + n_ctx, :], context)

    print("KERNEL_OK")
</pallas_src>

<mosaic_0001>
module attributes {stable_mosaic.version = 11 : i64} {
  func.func @_assemble_prompt_kernel(%arg0: memref<1x512xf32, #tpu.memory_space<vmem>>, %arg1: memref<8x512xf32, #tpu.memory_space<vmem>>, %arg2: memref<68x512xf32, #tpu.memory_space<vmem>>, %arg3: memref<77x512xf32, #tpu.memory_space<vmem>>) attributes {dimension_semantics = [], scalar_prefetch = 0 : i64, scratch_operands = 0 : i64, tpu.core_type = #tpu.core_type<tc>} {
    %c0 = arith.constant 0 : index
    %c0_0 = arith.constant 0 : index
    %0 = vector.load %arg0[%c0, %c0_0] : memref<1x512xf32, #tpu.memory_space<vmem>>, vector<1x512xf32>
    %c0_1 = arith.constant 0 : index
    %c0_2 = arith.constant 0 : index
    %1 = vector.load %arg3[%c0_1, %c0_2] : memref<77x512xf32, #tpu.memory_space<vmem>>, vector<1x512xf32>
    tpu.vector_store %arg3[%c0_1, %c0_2], %0 {strides = array<i32>} : memref<77x512xf32, #tpu.memory_space<vmem>>, vector<1x512xf32>,
    %c0_3 = arith.constant 0 : index
    %c0_4 = arith.constant 0 : index
    %2 = vector.load %arg1[%c0_3, %c0_4] : memref<8x512xf32, #tpu.memory_space<vmem>>, vector<8x512xf32>
    %c1 = arith.constant 1 : index
    %c0_5 = arith.constant 0 : index
    %3 = vector.load %arg3[%c1, %c0_5] : memref<77x512xf32, #tpu.memory_space<vmem>>, vector<8x512xf32>
    tpu.vector_store %arg3[%c1, %c0_5], %2 {strides = array<i32>} : memref<77x512xf32, #tpu.memory_space<vmem>>, vector<8x512xf32>,
    %c0_6 = arith.constant 0 : index
    %c0_7 = arith.constant 0 : index
    %4 = vector.load %arg2[%c0_6, %c0_7] : memref<68x512xf32, #tpu.memory_space<vmem>>, vector<68x512xf32>
    %c9 = arith.constant 9 : index
    %c0_8 = arith.constant 0 : index
    %5 = vector.load %arg3[%c9, %c0_8] : memref<77x512xf32, #tpu.memory_space<vmem>>, vector<68x512xf32>
    tpu.vector_store %arg3[%c9, %c0_8], %4 {strides = array<i32>} : memref<77x512xf32, #tpu.memory_space<vmem>>, vector<68x512xf32>,
    return
  }
}

</mosaic_0001>

<bundles_post_ra>
// kernel: assemble_prompts_pallas.1
= control target key start
LH: loop header
LB: loop body
LE: loop exit
PB: predicated region body
PF: predicated region fallthrough
CT: control target
= control target key end

     0   :  { %8 = vsyncpa [#allocation3], 0  ;;  %s589_s0 = inlined_call_operand.hbm [shape: f32[1,512], index: 0, kind: input, shape index: {}]   ;;  %s590_s1 = inlined_call_operand.hbm [shape: f32[8,512], index: 1, kind: input, shape index: {}]   ;;  %s591_s2 = inlined_call_operand.hbm [shape: f32[68,512], index: 2, kind: input, shape index: {}]   ;;  %s592_s3 = inlined_call_operand.vmem [shape: f32[77,512], index: 3, kind: output, shape index: {}]  }
   0x1   :  { %9 = vsyncpa [#allocation5], 0  ;;  %s26_s14 = sshll.u32 %s590_s1, 4  ;;  %s388_s15 = smov [#allocation4]   ;;  %s27_s14 = int_to_ptr.hbm [resolvable:$true] %s26_s14 }
   0x2   :  { %s28_s16 = sshll.u32 %s388_s15, 4  ;;  %s15_s19 = sshll.u32 %s589_s0, 4  ;;  %s29_s16 = int_to_ptr.vmem [resolvable:$true] %s28_s16  ;;  %s16_s19 = int_to_ptr.hbm [resolvable:$true] %s15_s19 }
   0x3   :  { %31 = dma.hbm_to_vmem [thread:$0]  %s27_s14, 512, %s29_s16, [#allocation5]  }
   0x4   :  { %s389_s20 = smov [#allocation2]   ;;  %s36_s24 = sshll.u32 %s591_s2, 4  ;;  %s37_s24 = int_to_ptr.hbm [resolvable:$true] %s36_s24 }
   0x5   :  { %s17_s21 = sshll.u32 %s389_s20, 4  ;;  %s390_s1 = smov [#allocation6]   ;;  %s18_s21 = int_to_ptr.vmem [resolvable:$true] %s17_s21 }
   0x6   :  { %20 = dma.hbm_to_vmem [thread:$0]  %s16_s19, 64, %s18_s21, [#allocation3]  }
   0x7   :  { %s38_s25 = sshll.u32 %s390_s1, 4  ;;  %s391_s26 = smov 512   ;;  %s39_s25 = int_to_ptr.vmem [resolvable:$true] %s38_s25 }
   0x8   :  { %s392_s27 = smov 32  }
   0x9   :  { %44 = dma.hbm_to_vmem [thread:$0]  %s37_s24, 4608, %s39_s25, [#allocation5], %s391_s26, %s391_s26, %s392_s27  }
   0xa   :  { %384 = dma.done.wait [#allocation3], 64  }
   0xb   :  { %385 = vsyncadd [#allocation3], 4294967232 }
   0xc   :  { %386 = dma.done.wait [#allocation5], 5120  }
   0xd   :  { %387 = vsyncadd [#allocation5], 4294962176  ;;  %v58_v0 = vlaneseq  ;;  %v57_v1 = vld [vmem:[#allocation2] sm:$0xf]  ;;  %v64_v2 = vld [vmem:[#allocation4] sm:$0xff]  ;;  %vm160_vm1 = vcmask 1040384  }
   0xe   :  { %v65_v3 = vld [vmem:[#allocation4 + $0x8] sm:$0xff]  ;;  %v72_v4 = vrot.slane %v64_v2, 7  ;;  %v66_v6 = vld [vmem:[#allocation4 + $0x10] sm:$0xff]  ;;  %v67_v7 = vld [vmem:[#allocation4 + $0x18] sm:$0xff] }
   0xf   :  { %vm60_vm0 = vcmp.lt.s32.totalorder %v58_v0, 512  ;;  %v73_v5 = vrot.slane %v65_v3, 7  ;;  %v74_v8 = vrot.slane %v66_v6, 7  ;;  %v88_v9 = vld [vmem:[#allocation6] sm:$0xff]  ;;  %v75_v10 = vrot.slane %v67_v7, 7  ;;  %v89_v11 = vld [vmem:[#allocation6 + $0x8] sm:$0xff] }
  0x10   :  { %62 = vst.msk [vmem:[%s592_s3] ss:$8 sm:$0xf] %vm60_vm0, %v57_v1  ;;  %v92_v12 = vld [vmem:[#allocation6 + $0x20] sm:$0xff]  ;;  %v90_v13 = vld [vmem:[#allocation6 + $0x10] sm:$0xff]  ;;  %v93_v14 = vld [vmem:[#allocation6 + $0x28] sm:$0xff] }
  0x11   :  { %80 = vst [vmem:[%s592_s3] sm:$0xfe] %v72_v4  ;;  %v161_v15 = vrot.slane %v88_v9, 7  ;;  %v91_v16 = vld [vmem:[#allocation6 + $0x18] sm:$0xff]  ;;  %v94_v17 = vld [vmem:[#allocation6 + $0x30] sm:$0xff]  ;;  %v162_v18 = vrot.slane %v89_v11, 7  ;;  %v165_v19 = vrot.slane %v92_v12, 7 }
  0x12   :  { %84 = vst [vmem:[%s592_s3 + $0x20] sm:$0x1] %v72_v4  ;;  %v95_v20 = vld [vmem:[#allocation6 + $0x38] sm:$0xff]  ;;  %v163_v21 = vrot.slane %v90_v13, 7  ;;  %v167_v22 = vrot.slane %v93_v14, 7  ;;  %v96_v23 = vld [vmem:[#allocation6 + $0x40] sm:$0xff] }
  0x13   :  { %81 = vst [vmem:[%s592_s3 + $0x8] sm:$0xfe] %v73_v5  ;;  %v164_v24 = vrot.slane %v91_v16, 7  ;;  %v169_v25 = vrot.slane %v94_v17, 7  ;;  %v97_v26 = vld [vmem:[#allocation6 + $0x48] sm:$0xff]  ;;  %v171_v27 = vrot.slane %v95_v20, 7  ;;  %v166_v29 = vsel %vm160_vm1, %v161_v15, %v165_v19 }
  0x14   :  { %85 = vst [vmem:[%s592_s3 + $0x28] sm:$0x1] %v73_v5  ;;  %v98_v28 = vld [vmem:[#allocation6 + $0x50] sm:$0xff]  ;;  %v173_v30 = vrot.slane %v96_v23, 7  ;;  %v99_v31 = vld [vmem:[#allocation6 + $0x58] sm:$0xff]  ;;  %v168_v32 = vsel %vm160_vm1, %v162_v18, %v167_v22  ;;  %v175_v33 = vrot.slane %v97_v26, 7 }
  0x15   :  { %82 = vst [vmem:[%s592_s3 + $0x10] sm:$0xfe] %v74_v8  ;;  %v100_v34 = vld [vmem:[#allocation6 + $0x60] sm:$0xff]  ;;  %v170_v35 = vsel %vm160_vm1, %v163_v21, %v169_v25  ;;  %v177_v36 = vrot.slane %v98_v28, 7  ;;  %v101_v37 = vld [vmem:[#allocation6 + $0x68] sm:$0xff]  ;;  %v172_v38 = vsel %vm160_vm1, %v164_v24, %v171_v27  ;;  %v179_v39 = vrot.slane %v99_v31, 7 }
  0x16   :  { %86 = vst [vmem:[%s592_s3 + $0x30] sm:$0x1] %v74_v8  ;;  %v102_v40 = vld [vmem:[#allocation6 + $0x70] sm:$0xff]  ;;  %v174_v41 = vsel %vm160_vm1, %v165_v19, %v173_v30  ;;  %v181_v42 = vrot.slane %v100_v34, 7  ;;  %v103_v43 = vld [vmem:[#allocation6 + $0x78] sm:$0xff]  ;;  %v176_v44 = vsel %vm160_vm1, %v167_v22, %v175_v33  ;;  %v183_v45 = vrot.slane %v101_v37, 7 }
  0x17   :  { %83 = vst [vmem:[%s592_s3 + $0x18] sm:$0xfe] %v75_v10  ;;  %v104_v46 = vld [vmem:[#allocation6 + $0x80] sm:$0xff]  ;;  %v178_v47 = vsel %vm160_vm1, %v169_v25, %v177_v36  ;;  %v185_v48 = vrot.slane %v102_v40, 7  ;;  %v105_v49 = vld [vmem:[#allocation6 + $0x88] sm:$0xff]  ;;  %v180_v50 = vsel %vm160_vm1, %v171_v27, %v179_v39  ;;  %v187_v51 = vrot.slane %v103_v43, 7 }
  0x18   :  { %87 = vst [vmem:[%s592_s3 + $0x38] sm:$0x1] %v75_v10  ;;  %v106_v52 = vld [vmem:[#allocation6 + $0x90] sm:$0xff]  ;;  %v182_v53 = vsel %vm160_vm1, %v173_v30, %v181_v42  ;;  %v189_v54 = vrot.slane %v104_v46, 7  ;;  %v107_v55 = vld [vmem:[#allocation6 + $0x98] sm:$0xff]  ;;  %v184_v56 = vsel %vm160_vm1, %v175_v33, %v183_v45  ;;  %v191_v57 = vrot.slane %v105_v49, 7 }
  0x19   :  { %265 = vst [vmem:[%s592_s3 + $0x20] sm:$0xfe] %v161_v15  ;;  %v108_v58 = vld [vmem:[#allocation6 + $0xa0] sm:$0xff]  ;;  %v186_v59 = vsel %vm160_vm1, %v177_v36, %v185_v48  ;;  %v193_v60 = vrot.slane %v106_v52, 7  ;;  %v109_v61 = vld [vmem:[#allocation6 + $0xa8] sm:$0xff]  ;;  %v188_v62 = vsel %vm160_vm1, %v179_v39, %v187_v51  ;;  %v195_v63 = vrot.slane %v107_v55, 7 }
  0x1a   :  { %266 = vst [vmem:[%s592_s3 + $0x28] sm:$0xfe] %v162_v18  ;;  %v110_v0 = vld [vmem:[#allocation6 + $0xb0] sm:$0xff]  ;;  %v190_v1 = vsel %vm160_vm1, %v181_v42, %v189_v54  ;;  %v197_v2 = vrot.slane %v108_v58, 7  ;;  %v111_v3 = vld [vmem:[#allocation6 + $0xb8] sm:$0xff]  ;;  %v192_v4 = vsel %vm160_vm1, %v183_v45, %v191_v57  ;;  %v199_v5 = vrot.slane %v109_v61, 7 }
  0x1b   :  { %267 = vst [vmem:[%s592_s3 + $0x30] sm:$0xfe] %v163_v21  ;;  %v112_v6 = vld [vmem:[#allocation6 + $0xc0] sm:$0xff]  ;;  %v194_v7 = vsel %vm160_vm1, %v185_v48, %v193_v60  ;;  %v201_v8 = vrot.slane %v110_v0, 7  ;;  %v113_v9 = vld [vmem:[#allocation6 + $0xc8] sm:$0xff]  ;;  %v196_v10 = vsel %vm160_vm1, %v187_v51, %v195_v63  ;;  %v203_v11 = vrot.slane %v111_v3, 7 }
  0x1c   :  { %268 = vst [vmem:[%s592_s3 + $0x38] sm:$0xfe] %v164_v24  ;;  %v114_v12 = vld [vmem:[#allocation6 + $0xd0] sm:$0xff]  ;;  %v198_v13 = vsel %vm160_vm1, %v189_v54, %v197_v2  ;;  %v205_v14 = vrot.slane %v112_v6, 7  ;;  %v115_v15 = vld [vmem:[#allocation6 + $0xd8] sm:$0xff]  ;;  %v200_v16 = vsel %vm160_vm1, %v191_v57, %v199_v5  ;;  %v207_v17 = vrot.slane %v113_v9, 7 }
  0x1d   :  { %269 = vst [vmem:[%s592_s3 + $0x40] sm:$0xff] %v166_v29  ;;  %v116_v18 = vld [vmem:[#allocation6 + $0xe0] sm:$0xff]  ;;  %v202_v19 = vsel %vm160_vm1, %v193_v60, %v201_v8  ;;  %v209_v20 = vrot.slane %v114_v12, 7  ;;  %v117_v21 = vld [vmem:[#allocation6 + $0xe8] sm:$0xff]  ;;  %v204_v22 = vsel %vm160_vm1, %v195_v63, %v203_v11  ;;  %v211_v23 = vrot.slane %v115_v15, 7  ;;  %v118_v24 = vld [vmem:[#allocation6 + $0xf0] sm:$0xff] }
  0x1e   :  { %270 = vst [vmem:[%s592_s3 + $0x48] sm:$0xff] %v168_v32  ;;  %v206_v25 = vsel %vm160_vm1, %v197_v2, %v205_v14  ;;  %v213_v26 = vrot.slane %v116_v18, 7  ;;  %v119_v27 = vld [vmem:[#allocation6 + $0xf8] sm:$0xff]  ;;  %v208_v28 = vsel %vm160_vm1, %v199_v5, %v207_v17  ;;  %v215_v29 = vrot.slane %v117_v21, 7  ;;  %v120_v30 = vld [vmem:[#allocation6 + $0x100] sm:$0xf] }
  0x1f   :  { %271 = vst [vmem:[%s592_s3 + $0x50] sm:$0xff] %v170_v35  ;;  %v210_v31 = vsel %vm160_vm1, %v201_v8, %v209_v20  ;;  %v217_v32 = vrot.slane %v118_v24, 7  ;;  %v121_v33 = vld [vmem:[#allocation6 + $0x108] sm:$0xf]  ;;  %v212_v34 = vsel %vm160_vm1, %v203_v11, %v211_v23  ;;  %v219_v35 = vrot.slane %v119_v27, 7 }
  0x20   :  { %272 = vst [vmem:[%s592_s3 + $0x58] sm:$0xff] %v172_v38  ;;  %v122_v36 = vld [vmem:[#allocation6 + $0x110] sm:$0xf]  ;;  %v214_v37 = vsel %vm160_vm1, %v205_v14, %v213_v26  ;;  %v221_v38 = vrot.slane %v120_v30, 7  ;;  %v123_v39 = vld [vmem:[#allocation6 + $0x118] sm:$0xf]  ;;  %v216_v40 = vsel %vm160_vm1, %v207_v17, %v215_v29 }
  0x21   :  { %273 = vst [vmem:[%s592_s3 + $0x60] sm:$0xff] %v174_v41  ;;  %v223_v41 = vrot.slane %v121_v33, 7  ;;  %v218_v42 = vsel %vm160_vm1, %v209_v20, %v217_v32  ;;  %v225_v43 = vrot.slane %v122_v36, 7  ;;  %v227_v45 = vrot.slane %v123_v39, 7 }
  0x22   :  { %274 = vst [vmem:[%s592_s3 + $0x68] sm:$0xff] %v176_v44  ;;  %v220_v44 = vsel %vm160_vm1, %v211_v23, %v219_v35  ;;  %v222_v46 = vsel %vm160_vm1, %v213_v26, %v221_v38 }
  0x23   :  { %275 = vst [vmem:[%s592_s3 + $0x70] sm:$0xff] %v178_v47  ;;  %v224_v47 = vsel %vm160_vm1, %v215_v29, %v223_v41  ;;  %v226_v48 = vsel %vm160_vm1, %v217_v32, %v225_v43  ;;  %v228_v49 = vsel %vm160_vm1, %v219_v35, %v227_v45 }
  0x24   :  { %276 = vst [vmem:[%s592_s3 + $0x78] sm:$0xff] %v180_v50 }
  0x25   :  { %277 = vst [vmem:[%s592_s3 + $0x80] sm:$0xff] %v182_v53 }
  0x26   :  { %278 = vst [vmem:[%s592_s3 + $0x88] sm:$0xff] %v184_v56 }
  0x27   :  { %279 = vst [vmem:[%s592_s3 + $0x90] sm:$0xff] %v186_v59 }
  0x28   :  { %280 = vst [vmem:[%s592_s3 + $0x98] sm:$0xff] %v188_v62 }
  0x29   :  { %281 = vst [vmem:[%s592_s3 + $0xa0] sm:$0xff] %v190_v1 }
  0x2a   :  { %282 = vst [vmem:[%s592_s3 + $0xa8] sm:$0xff] %v192_v4 }
  0x2b   :  { %283 = vst [vmem:[%s592_s3 + $0xb0] sm:$0xff] %v194_v7 }
  0x2c   :  { %284 = vst [vmem:[%s592_s3 + $0xb8] sm:$0xff] %v196_v10 }
  0x2d   :  { %285 = vst [vmem:[%s592_s3 + $0xc0] sm:$0xff] %v198_v13 }
  0x2e   :  { %286 = vst [vmem:[%s592_s3 + $0xc8] sm:$0xff] %v200_v16 }
  0x2f   :  { %287 = vst [vmem:[%s592_s3 + $0xd0] sm:$0xff] %v202_v19 }
  0x30   :  { %288 = vst [vmem:[%s592_s3 + $0xd8] sm:$0xff] %v204_v22 }
  0x31   :  { %289 = vst [vmem:[%s592_s3 + $0xe0] sm:$0xff] %v206_v25 }
  0x32   :  { %290 = vst [vmem:[%s592_s3 + $0xe8] sm:$0xff] %v208_v28 }
  0x33   :  { %291 = vst [vmem:[%s592_s3 + $0xf0] sm:$0xff] %v210_v31 }
  0x34   :  { %292 = vst [vmem:[%s592_s3 + $0xf8] sm:$0xff] %v212_v34 }
  0x35   :  { %293 = vst [vmem:[%s592_s3 + $0x100] sm:$0xff] %v214_v37 }
  0x36   :  { %294 = vst [vmem:[%s592_s3 + $0x108] sm:$0xff] %v216_v40 }
  0x37   :  { %295 = vst [vmem:[%s592_s3 + $0x110] sm:$0xff] %v218_v42 }
  0x38   :  { %296 = vst [vmem:[%s592_s3 + $0x118] sm:$0xff] %v220_v44 }
  0x39   :  { %297 = vst [vmem:[%s592_s3 + $0x120] sm:$0x1f] %v222_v46 }
  0x3a   :  { %298 = vst [vmem:[%s592_s3 + $0x128] sm:$0x1f] %v224_v47 }
  0x3b   :  { %299 = vst [vmem:[%s592_s3 + $0x130] sm:$0x1f] %v226_v48 }
  0x3c   :  { %300 = vst [vmem:[%s592_s3 + $0x138] sm:$0x1f] %v228_v49 }
  0x3d   :  { %305 = vsyncpa [#allocation3], 1 }
  0x3e   :  { %306 = vsyncpa [#allocation5], 1 }

</bundles_post_ra>
